<compile_context>
chip_gen: v5e
topology: v5e:2x2
jax: 0.10.0
libtpu: 0.0.40
codegen_flags: <defaults>
</compile_context>

<pallas_src>
import functools

import jax
import jax.numpy as jnp
from jax import lax
from jax.experimental import pallas as pl
from jax.experimental.pallas import tpu as pltpu


def _round_up(x, m):
    return (x + m - 1) // m * m


def _pick_block_n(n, d, itemsize, row_align, vmem_budget_bytes=24 * 1024 * 1024):
    # Double-buffered storage tile + f32 working copies of the same tile.
    per_row = d * (2 * itemsize + 8) + 64
    tn = max(row_align, min(512, vmem_budget_bytes // max(per_row, 1)))
    return int(tn)


def _loss_kernel(qi_ref, z_ref, zq_ref, cores_ref, et_ref, znbr_ref, nbc_ref,
                 nbt_ref, scal_ref, out_ref, m_sc, l_sc, nsq_sc,
                 *, temperature, alpha, n_valid):
    i = pl.program_id(0)
    n_steps = pl.num_programs(0)
    tn = z_ref.shape[0]
    inv_t = 1.0 / temperature
    NEG = -1e30

    # Initialize the carried accumulators on the first tile.
    @pl.when(i == 0)
    def _init():
        m_sc[...] = jnp.full_like(m_sc, NEG)
        l_sc[...] = jnp.zeros_like(l_sc)
        nsq_sc[...] = jnp.zeros_like(nsq_sc)

    # ---- F.normalize(z, dim=1) for this tile (torch eps = 1e-12) ----
    z = z_ref[...].astype(jnp.float32)                       # [TN, D]
    sq = jnp.sum(z * z, axis=1, keepdims=True)               # [TN, 1]
    rden = 1.0 / jnp.maximum(jnp.sqrt(sq), 1e-12)            # [TN, 1]
    zn = z * rden                                            # [TN, D]

    # ---- query embedding (row DMA'd via the scalar-prefetch index_map) ----
    zq = zq_ref[0].astype(jnp.float32)                       # [1, D]
    qr = 1.0 / jnp.maximum(
        jnp.sqrt(jnp.sum(zq * zq, axis=-1, keepdims=True)), 1e-12)
    q = zq * qr                                              # [1, D]

    # ---- temporal logits for this tile (lane-dense [1, TN]) ----
    s = lax.dot_general(q, zn, (((1,), (1,)), ((), ())),
                        preferred_element_type=jnp.float32) * inv_t
    gidx = i * tn + lax.broadcasted_iota(jnp.int32, (1, tn), 1)
    s = jnp.where(gidx < n_valid, s, NEG)                    # mask padded rows

    # ---- online softmax + l2 accumulation ----
    m_prev = m_sc[...]                                       # [1, 1]
    m_new = jnp.maximum(m_prev, jnp.max(s, axis=-1, keepdims=True))
    l_sc[...] = (l_sc[...] * jnp.exp(m_prev - m_new)
                 + jnp.sum(jnp.exp(s - m_new), axis=-1, keepdims=True))
    m_sc[...] = m_new
    # sum_rows ||zn_row||^2, reusing the row norms (no second O(TN*D) pass).
    nsq_sc[...] = nsq_sc[...] + jnp.sum(sq * rden * rden, axis=0, keepdims=True)

    # ---- finalize on the last tile ----
    @pl.when(i == n_steps - 1)
    def _finalize():
        m = m_sc[...]                                        # [1, 1]
        l = l_sc[...]                                        # [1, 1]
        ct = scal_ref[0]                                     # current_time (SMEM)
        q_core = scal_ref[1]                                 # query core   (SMEM)

        # temporal softmax probabilities at the neighbor rows (lane-dense [1, M])
        znbr = znbr_ref[...].astype(jnp.float32)             # [M, D]
        nsq = jnp.sum(znbr * znbr, axis=1, keepdims=True)
        znbr = znbr * (1.0 / jnp.maximum(jnp.sqrt(nsq), 1e-12))
        s_nb = lax.dot_general(q, znbr, (((1,), (1,)), ((), ())),
                               preferred_element_type=jnp.float32) * inv_t
        p_t_nb = jnp.exp(s_nb - m) / l                       # [1, M]

        # core-similarity softmax (cores row is VMEM-resident, [1, N])
        cores = cores_ref[...]
        cd = jnp.abs(q_core - cores)
        rmax_cd = 1.0 / (jnp.max(cd, axis=-1, keepdims=True) + 1e-8)
        csim = jnp.exp(-(cd * rmax_cd) * inv_t)              # [1, N]
        c_max = jnp.max(csim, axis=-1, keepdims=True)
        c_sum = jnp.sum(jnp.exp(csim - c_max), axis=-1, keepdims=True)
        nbc = nbc_ref[...]                                   # [1, M]
        csim_nb = jnp.exp(-(jnp.abs(q_core - nbc) * rmax_cd) * inv_t)
        p_c_nb = jnp.exp(csim_nb - c_max) / c_sum            # [1, M]

        log_prob_nb = jnp.log(alpha * p_t_nb + (1.0 - alpha) * p_c_nb + 1e-8)

        # temporal edge weights (edge-times row is VMEM-resident, [1, E])
        et = et_ref[...]
        td = ct - et
        rtd = 1.0 / (jnp.max(td, axis=-1, keepdims=True) + 1e-8)
        tw = jnp.exp(-(td * rtd))
        rnorm = 1.0 / jnp.maximum(
            jnp.sum(jnp.abs(tw), axis=-1, keepdims=True), 1e-12)  # F.normalize p=1
        nbt = nbt_ref[...]                                   # [1, M]
        tw_nb = jnp.exp(-((ct - nbt) * rtd)) * rnorm         # [1, M]

        contrast = -jnp.sum(log_prob_nb * tw_nb, axis=-1, keepdims=True)
        core_align = jnp.mean((nbc - q_core) ** 2, axis=-1, keepdims=True)
        l2_reg = 1e-4 * jnp.sqrt(nsq_sc[...])

        out_ref[...] = (contrast + 0.1 * core_align + l2_reg).astype(jnp.float32)


def temporal_contrastive_loss(z, query_idx, neighbor_idx, edge_times,
                              current_time, G_x, temperature=0.07, alpha=0.5,
                              *, z_storage_dtype=None, block_n=None):
    """Pallas TPU implementation of TemporalContrastiveLoss.forward.

    z_storage_dtype: optional narrower dtype (e.g. jnp.bfloat16) used only for
      the HBM->VMEM streaming of z; all in-kernel math is f32.
    """
    z = jnp.asarray(z, jnp.float32)
    N, D = z.shape
    E = int(edge_times.shape[0])
    M = int(neighbor_idx.shape[0])

    store_dtype = (jnp.dtype(z_storage_dtype) if z_storage_dtype is not None
                   else jnp.dtype(jnp.float32))
    z_store = z.astype(store_dtype)

    # Sublane alignment of the streamed tile: 8 rows for f32, 16 for bf16.
    row_align = 8 * max(1, 4 // store_dtype.itemsize)
    if block_n is None:
        block_n = _pick_block_n(N, D, store_dtype.itemsize, row_align)
    block_n = max(row_align, (int(block_n) // row_align) * row_align)
    block_n = min(block_n, _round_up(N, row_align))
    n_pad = _round_up(N, block_n)
    if n_pad != N:
        z_store = jnp.pad(z_store, ((0, n_pad - N), (0, 0)))
    num_tiles = n_pad // block_n

    # ---- cheap XLA glue: index gathers of *raw inputs*, no one-hot matrices ----
    qi = jnp.asarray(query_idx, jnp.int32).reshape((1,))
    nb = jnp.asarray(neighbor_idx, jnp.int32)
    all_cores = G_x[:N, -1].astype(jnp.float32)              # [N]
    cores = all_cores.reshape(1, N)
    q_core = all_cores[jnp.asarray(query_idx, jnp.int32)]    # scalar
    edge_times_f = jnp.asarray(edge_times, jnp.float32).reshape(1, E)
    # NOTE: like the PyTorch module, neighbor_idx indexes *both* nodes and the
    # edge-time vector (time_weights[neighbor_idx]); assumes max(nb) < E.
    z_nbr = jnp.take(z_store, nb, axis=0)                    # [M, D]
    nbr_cores = all_cores[nb].reshape(1, M)                  # [1, M]
    nbr_et = edge_times_f[0, nb].reshape(1, M)               # [1, M]
    scalars = jnp.stack([jnp.asarray(current_time, jnp.float32).reshape(()),
                         q_core.reshape(())]).astype(jnp.float32)

    # 3-D view of z so the query row can be fetched with a (1, 1, D) block whose
    # leading block index comes from the scalar-prefetched query_idx.
    z_rows = z_store.reshape(n_pad, 1, D)

    kernel = functools.partial(_loss_kernel, temperature=float(temperature),
                               alpha=float(alpha), n_valid=N)

    grid_spec = pltpu.PrefetchScalarGridSpec(
        num_scalar_prefetch=1,
        grid=(num_tiles,),
        in_specs=[
            pl.BlockSpec((block_n, D), lambda i, qi_ref: (i, 0)),          # z (streamed)
            pl.BlockSpec((1, 1, D), lambda i, qi_ref: (qi_ref[0], 0, 0)),  # query row
            pl.BlockSpec((1, N), lambda i, qi_ref: (0, 0)),                # cores (resident)
            pl.BlockSpec((1, E), lambda i, qi_ref: (0, 0)),                # edge times (resident)
            pl.BlockSpec((M, D), lambda i, qi_ref: (0, 0)),                # neighbor z rows
            pl.BlockSpec((1, M), lambda i, qi_ref: (0, 0)),                # neighbor cores
            pl.BlockSpec((1, M), lambda i, qi_ref: (0, 0)),                # neighbor edge times
            pl.BlockSpec(memory_space=pltpu.MemorySpace.SMEM),             # [ct, q_core]
        ],
        out_specs=pl.BlockSpec((1, 1), lambda i, qi_ref: (0, 0)),
        scratch_shapes=[pltpu.VMEM((1, 1), jnp.float32),    # running max (temporal logits)
                        pltpu.VMEM((1, 1), jnp.float32),    # running sum of exp
                        pltpu.VMEM((1, 1), jnp.float32)],   # sum ||z_row||^2 (l2 reg)
    )

    out = pl.pallas_call(
        kernel,
        out_shape=jax.ShapeDtypeStruct((1, 1), jnp.float32),
        grid_spec=grid_spec,
        compiler_params=pltpu.CompilerParams(
            # Single N axis carries the online-softmax accumulators -> "arbitrary".
            # (For very large N on v7x this axis could additionally be split
            #  across the two TensorCores with a tiny combine of (m, l, nsq).)
            dimension_semantics=("arbitrary",),
            vmem_limit_bytes=48 * 1024 * 1024,
        ),
    )(qi, z_store, z_rows, cores, edge_times_f, z_nbr, nbr_cores, nbr_et, scalars)
    return out[0, 0]


def _reference(z, query_idx, neighbor_idx, edge_times, current_time, G_x,
               temperature=0.07, alpha=0.5):
    """Pure-JAX reference mirroring the PyTorch forward."""
    z = z.astype(jnp.float32)
    N = z.shape[0]
    z = z / jnp.maximum(jnp.linalg.norm(z, axis=1, keepdims=True), 1e-12)
    q_emb = z[query_idx][None, :]
    temporal_sim = (q_emb @ z.T) / temperature
    q_core = G_x[query_idx, -1]
    all_cores = G_x[:N, -1]
    core_diff = jnp.abs(q_core - all_cores)
    core_diff = core_diff / (core_diff.max() + 1e-8)
    core_sim = jnp.exp(-core_diff / temperature)[None, :]
    temporal_sim = jax.nn.softmax(temporal_sim, axis=1)
    core_sim = jax.nn.softmax(core_sim, axis=1)
    combined = alpha * temporal_sim + (1 - alpha) * core_sim
    td = (current_time - edge_times).astype(jnp.float32)
    td = td / (td.max() + 1e-8)
    tw = jnp.exp(-td)
    tw = tw / jnp.maximum(jnp.sum(jnp.abs(tw)), 1e-12)
    nbr_tw = tw[neighbor_idx]
    log_prob = jnp.log(combined + 1e-8)
    pos = log_prob[0, neighbor_idx]
    contrast = -(pos * nbr_tw).sum()
    nbr_cores = G_x[neighbor_idx, -1]
    core_align = jnp.mean((nbr_cores - q_core) ** 2)
    return contrast + 0.1 * core_align + 1e-4 * jnp.linalg.norm(z)


if __name__ == "__main__":
    key = jax.random.PRNGKey(0)
    k1, k2, k3, k4 = jax.random.split(key, 4)

    N, D, F, M = 16, 32, 4, 8          # nodes, embedding dim, node feat dim, #neighbors
    E = N                              # edge_times length (neighbor_idx indexes both)

    z = jax.random.normal(k1, (N, D), dtype=jnp.float32)
    G_x = jax.random.normal(k2, (N, F), dtype=jnp.float32)
    edge_times = jax.random.uniform(k3, (E,), dtype=jnp.float32, minval=0.0, maxval=10.0)
    current_time = jnp.float32(12.0)
    query_idx = jnp.array(3, dtype=jnp.int32)
    neighbor_idx = jax.random.randint(k4, (M,), 0, N, dtype=jnp.int32)

    # f32 storage, block_n=8 -> 2 tiles: exercises the online-softmax pipeline.
    loss = temporal_contrastive_loss(z, query_idx, neighbor_idx, edge_times,
                                     current_time, G_x, block_n=8)
    loss = jax.block_until_ready(loss)
    ref = _reference(z, query_idx, neighbor_idx, edge_times, current_time, G_x)
    assert jnp.isfinite(loss), "kernel produced non-finite loss"
    assert jnp.allclose(loss, ref, rtol=2e-4, atol=2e-4), (loss, ref)

    # bf16 storage for z (halved HBM->VMEM traffic); math stays f32 in-kernel.
    loss_bf16 = temporal_contrastive_loss(z, query_idx, neighbor_idx, edge_times,
                                          current_time, G_x, block_n=8,
                                          z_storage_dtype=jnp.bfloat16)
    loss_bf16 = jax.block_until_ready(loss_bf16)
    ref_bf16 = _reference(z.astype(jnp.bfloat16).astype(jnp.float32), query_idx,
                          neighbor_idx, edge_times, current_time, G_x)
    assert jnp.isfinite(loss_bf16), "bf16-storage kernel produced non-finite loss"
    assert jnp.allclose(loss_bf16, ref_bf16, rtol=5e-3, atol=5e-3), (loss_bf16, ref_bf16)

    print("KERNEL_OK")
</pallas_src>

<mosaic_0001>
module attributes {stable_mosaic.version = 11 : i64} {
  func.func @_loss_kernel(%arg0: i32, %arg1: memref<1xi32, #tpu.memory_space<smem>>, %arg2: memref<8x32xf32, #tpu.memory_space<vmem>>, %arg3: memref<1x1x32xf32, #tpu.memory_space<vmem>>, %arg4: memref<1x16xf32, #tpu.memory_space<vmem>>, %arg5: memref<1x16xf32, #tpu.memory_space<vmem>>, %arg6: memref<8x32xf32, #tpu.memory_space<vmem>>, %arg7: memref<1x8xf32, #tpu.memory_space<vmem>>, %arg8: memref<1x8xf32, #tpu.memory_space<vmem>>, %arg9: memref<2xf32, #tpu.memory_space<smem>>, %arg10: memref<1x1xf32, #tpu.memory_space<vmem>>, %arg11: memref<1x1xf32, #tpu.memory_space<vmem>>, %arg12: memref<1x1xf32, #tpu.memory_space<vmem>>, %arg13: memref<1x1xf32, #tpu.memory_space<vmem>>) attributes {dimension_semantics = [#tpu.dimension_semantics<arbitrary>], iteration_bounds = array<i64: 2>, scalar_prefetch = 1 : i64, scratch_operands = 3 : i64, tpu.core_type = #tpu.core_type<tc>, window_params = [{transform_indices = @transform_0, window_bounds = array<i64: 8, 32>}, {transform_indices = @transform_1, window_bounds = array<i64: 1, 1, 32>}, {pipeline_mode = #tpu.pipeline_mode<synchronous>, transform_indices = @transform_2, window_bounds = array<i64: 1, 16>}, {pipeline_mode = #tpu.pipeline_mode<synchronous>, transform_indices = @transform_3, window_bounds = array<i64: 1, 16>}, {pipeline_mode = #tpu.pipeline_mode<synchronous>, transform_indices = @transform_4, window_bounds = array<i64: 8, 32>}, {pipeline_mode = #tpu.pipeline_mode<synchronous>, transform_indices = @transform_5, window_bounds = array<i64: 1, 8>}, {pipeline_mode = #tpu.pipeline_mode<synchronous>, transform_indices = @transform_6, window_bounds = array<i64: 1, 8>}, {transform_indices = @transform_7, window_bounds = array<i64: 2>}, {pipeline_mode = #tpu.pipeline_mode<synchronous>, transform_indices = @transform_8, window_bounds = array<i64: 1, 1>}]} {
    %c0_i32 = arith.constant 0 : i32
    %0 = arith.cmpi eq, %arg0, %c0_i32 : i32
    %1 = arith.extui %0 : i1 to i32
    %c0_i32_0 = arith.constant 0 : i32
    %2 = arith.cmpi ne, %1, %c0_i32_0 : i32
    scf.if %2 {
      %cst_29 = arith.constant -1.000000e+30 : f32
      %63 = vector.broadcast %cst_29 : f32 to vector<1x1xf32>
      %c0_30 = arith.constant 0 : index
      %c0_31 = arith.constant 0 : index
      %64 = vector.load %arg11[%c0_30, %c0_31] : memref<1x1xf32, #tpu.memory_space<vmem>>, vector<1x1xf32>
      tpu.vector_store %arg11[%c0_30, %c0_31], %63 {strides = array<i32>} : memref<1x1xf32, #tpu.memory_space<vmem>>, vector<1x1xf32>,
      %cst_32 = arith.constant 0.000000e+00 : f32
      %65 = vector.broadcast %cst_32 : f32 to vector<1x1xf32>
      %c0_33 = arith.constant 0 : index
      %c0_34 = arith.constant 0 : index
      %66 = vector.load %arg12[%c0_33, %c0_34] : memref<1x1xf32, #tpu.memory_space<vmem>>, vector<1x1xf32>
      tpu.vector_store %arg12[%c0_33, %c0_34], %65 {strides = array<i32>} : memref<1x1xf32, #tpu.memory_space<vmem>>, vector<1x1xf32>,
      %cst_35 = arith.constant 0.000000e+00 : f32
      %67 = vector.broadcast %cst_35 : f32 to vector<1x1xf32>
      %c0_36 = arith.constant 0 : index
      %c0_37 = arith.constant 0 : index
      %68 = vector.load %arg13[%c0_36, %c0_37] : memref<1x1xf32, #tpu.memory_space<vmem>>, vector<1x1xf32>
      tpu.vector_store %arg13[%c0_36, %c0_37], %67 {strides = array<i32>} : memref<1x1xf32, #tpu.memory_space<vmem>>, vector<1x1xf32>,
    } else {
    }
    %c0 = arith.constant 0 : index
    %c0_1 = arith.constant 0 : index
    %3 = vector.load %arg2[%c0, %c0_1] : memref<8x32xf32, #tpu.memory_space<vmem>>, vector<8x32xf32>
    %4 = arith.mulf %3, %3 : vector<8x32xf32>
    %cst = arith.constant dense<0.000000e+00> : vector<8xf32>
    %5 = vector.multi_reduction <add>, %4, %cst [1] : vector<8x32xf32> to vector<8xf32>
    %6 = vector.shape_cast %5 : vector<8xf32> to vector<8x1xf32>
    %7 = math.sqrt %6 : vector<8x1xf32>
    %cst_2 = arith.constant 9.99999996E-13 : f32
    %8 = vector.broadcast %cst_2 : f32 to vector<8x1xf32>
    %9 = arith.maximumf %7, %8 : vector<8x1xf32>
    %cst_3 = arith.constant 1.000000e+00 : f32
    %10 = vector.broadcast %cst_3 : f32 to vector<8x1xf32>
    %11 = arith.divf %10, %9 : vector<8x1xf32>
    %12 = vector.broadcast %11 : vector<8x1xf32> to vector<8x32xf32>
    %13 = arith.mulf %3, %12 : vector<8x32xf32>
    %c0_4 = arith.constant 0 : index
    %c0_5 = arith.constant 0 : index
    %c0_6 = arith.constant 0 : index
    %14 = vector.load %arg3[%c0_4, %c0_5, %c0_6] : memref<1x1x32xf32, #tpu.memory_space<vmem>>, vector<1x1x32xf32>
    %15 = vector.shape_cast %14 : vector<1x1x32xf32> to vector<1x32xf32>
    %16 = arith.mulf %15, %15 : vector<1x32xf32>
    %cst_7 = arith.constant dense<0.000000e+00> : vector<1xf32>
    %17 = vector.multi_reduction <add>, %16, %cst_7 [1] : vector<1x32xf32> to vector<1xf32>
    %18 = vector.shape_cast %17 : vector<1xf32> to vector<1x1xf32>
    %19 = math.sqrt %18 : vector<1x1xf32>
    %cst_8 = arith.constant 9.99999996E-13 : f32
    %20 = vector.broadcast %cst_8 : f32 to vector<1x1xf32>
    %21 = arith.maximumf %19, %20 : vector<1x1xf32>
    %cst_9 = arith.constant 1.000000e+00 : f32
    %22 = vector.broadcast %cst_9 : f32 to vector<1x1xf32>
    %23 = arith.divf %22, %21 : vector<1x1xf32>
    %24 = vector.broadcast %23 : vector<1x1xf32> to vector<1x32xf32>
    %25 = arith.mulf %15, %24 : vector<1x32xf32>
    %cst_10 = arith.constant dense<0.000000e+00> : vector<1x8xf32>
    %26 = tpu.matmul %25, %13, %cst_10 {dimension_numbers = #tpu.dot_dimension_numbers<[1], [1], [0], [0], [0, 0, 1, 0], [], []>} : vector<1x32xf32>, vector<8x32xf32>, vector<1x8xf32> -> vector<1x8xf32>
    %cst_11 = arith.constant 14.2857141 : f32
    %27 = vector.broadcast %cst_11 : f32 to vector<1x8xf32>
    %28 = arith.mulf %26, %27 : vector<1x8xf32>
    %c8_i32 = arith.constant 8 : i32
    %29 = arith.muli %arg0, %c8_i32 : i32
    %30 = tpu.iota {dimensions = array<i32: 1>} : vector<1x8xi32>
    %31 = vector.broadcast %29 : i32 to vector<1x8xi32>
    %32 = arith.addi %31, %30 : vector<1x8xi32>
    %c16_i32 = arith.constant 16 : i32
    %33 = vector.broadcast %c16_i32 : i32 to vector<1x8xi32>
    %34 = arith.cmpi slt, %32, %33 : vector<1x8xi32>
    %cst_12 = arith.constant -1.000000e+30 : f32
    %35 = vector.broadcast %cst_12 : f32 to vector<1x8xf32>
    %36 = arith.select %34, %28, %35 : vector<1x8xi1>, vector<1x8xf32>
    %c0_13 = arith.constant 0 : index
    %c0_14 = arith.constant 0 : index
    %37 = vector.load %arg11[%c0_13, %c0_14] : memref<1x1xf32, #tpu.memory_space<vmem>>, vector<1x1xf32>
    %cst_15 = arith.constant dense<0xFF800000> : vector<1xf32>
    %38 = vector.multi_reduction <maximumf>, %36, %cst_15 [1] : vector<1x8xf32> to vector<1xf32>
    %39 = vector.shape_cast %38 : vector<1xf32> to vector<1x1xf32>
    %40 = arith.maximumf %37, %39 : vector<1x1xf32>
    %c0_16 = arith.constant 0 : index
    %c0_17 = arith.constant 0 : index
    %41 = vector.load %arg12[%c0_16, %c0_17] : memref<1x1xf32, #tpu.memory_space<vmem>>, vector<1x1xf32>
    %42 = arith.subf %37, %40 : vector<1x1xf32>
    %43 = math.exp %42 : vector<1x1xf32>
    %44 = arith.mulf %41, %43 : vector<1x1xf32>
    %45 = vector.broadcast %40 : vector<1x1xf32> to vector<1x8xf32>
    %46 = arith.subf %36, %45 : vector<1x8xf32>
    %47 = math.exp %46 : vector<1x8xf32>
    %cst_18 = arith.constant dense<0.000000e+00> : vector<1xf32>
    %48 = vector.multi_reduction <add>, %47, %cst_18 [1] : vector<1x8xf32> to vector<1xf32>
    %49 = vector.shape_cast %48 : vector<1xf32> to vector<1x1xf32>
    %50 = arith.addf %44, %49 : vector<1x1xf32>
    %c0_19 = arith.constant 0 : index
    %c0_20 = arith.constant 0 : index
    %51 = vector.load %arg12[%c0_19, %c0_20] : memref<1x1xf32, #tpu.memory_space<vmem>>, vector<1x1xf32>
    tpu.vector_store %arg12[%c0_19, %c0_20], %50 {strides = array<i32>} : memref<1x1xf32, #tpu.memory_space<vmem>>, vector<1x1xf32>,
    %c0_21 = arith.constant 0 : index
    %c0_22 = arith.constant 0 : index
    %52 = vector.load %arg11[%c0_21, %c0_22] : memref<1x1xf32, #tpu.memory_space<vmem>>, vector<1x1xf32>
    tpu.vector_store %arg11[%c0_21, %c0_22], %40 {strides = array<i32>} : memref<1x1xf32, #tpu.memory_space<vmem>>, vector<1x1xf32>,
    %c0_23 = arith.constant 0 : index
    %c0_24 = arith.constant 0 : index
    %53 = vector.load %arg13[%c0_23, %c0_24] : memref<1x1xf32, #tpu.memory_space<vmem>>, vector<1x1xf32>
    %54 = arith.mulf %6, %11 : vector<8x1xf32>
    %55 = arith.mulf %54, %11 : vector<8x1xf32>
    %cst_25 = arith.constant dense<0.000000e+00> : vector<1xf32>
    %56 = vector.multi_reduction <add>, %55, %cst_25 [0] : vector<8x1xf32> to vector<1xf32>
    %57 = vector.shape_cast %56 : vector<1xf32> to vector<1x1xf32>
    %58 = arith.addf %53, %57 : vector<1x1xf32>
    %c0_26 = arith.constant 0 : index
    %c0_27 = arith.constant 0 : index
    %59 = vector.load %arg13[%c0_26, %c0_27] : memref<1x1xf32, #tpu.memory_space<vmem>>, vector<1x1xf32>
    tpu.vector_store %arg13[%c0_26, %c0_27], %58 {strides = array<i32>} : memref<1x1xf32, #tpu.memory_space<vmem>>, vector<1x1xf32>,
    %c1_i32 = arith.constant 1 : i32
    %60 = arith.cmpi eq, %arg0, %c1_i32 : i32
    %61 = arith.extui %60 : i1 to i32
    %c0_i32_28 = arith.constant 0 : i32
    %62 = arith.cmpi ne, %61, %c0_i32_28 : i32
    scf.if %62 {
      %c0_29 = arith.constant 0 : index
      %c0_30 = arith.constant 0 : index
      %63 = vector.load %arg11[%c0_29, %c0_30] : memref<1x1xf32, #tpu.memory_space<vmem>>, vector<1x1xf32>
      %c0_31 = arith.constant 0 : index
      %c0_32 = arith.constant 0 : index
      %64 = vector.load %arg12[%c0_31, %c0_32] : memref<1x1xf32, #tpu.memory_space<vmem>>, vector<1x1xf32>
      %c0_33 = arith.constant 0 : index
      %65 = memref.load %arg9[%c0_33] : memref<2xf32, #tpu.memory_space<smem>>
      %c1 = arith.constant 1 : index
      %66 = memref.load %arg9[%c1] : memref<2xf32, #tpu.memory_space<smem>>
      %c0_34 = arith.constant 0 : index
      %c0_35 = arith.constant 0 : index
      %67 = vector.load %arg6[%c0_34, %c0_35] : memref<8x32xf32, #tpu.memory_space<vmem>>, vector<8x32xf32>
      %68 = arith.mulf %67, %67 : vector<8x32xf32>
      %cst_36 = arith.constant dense<0.000000e+00> : vector<8xf32>
      %69 = vector.multi_reduction <add>, %68, %cst_36 [1] : vector<8x32xf32> to vector<8xf32>
      %70 = vector.shape_cast %69 : vector<8xf32> to vector<8x1xf32>
      %71 = math.sqrt %70 : vector<8x1xf32>
      %cst_37 = arith.constant 9.99999996E-13 : f32
      %72 = vector.broadcast %cst_37 : f32 to vector<8x1xf32>
      %73 = arith.maximumf %71, %72 : vector<8x1xf32>
      %cst_38 = arith.constant 1.000000e+00 : f32
      %74 = vector.broadcast %cst_38 : f32 to vector<8x1xf32>
      %75 = arith.divf %74, %73 : vector<8x1xf32>
      %76 = vector.broadcast %75 : vector<8x1xf32> to vector<8x32xf32>
      %77 = arith.mulf %67, %76 : vector<8x32xf32>
      %cst_39 = arith.constant dense<0.000000e+00> : vector<1x8xf32>
      %78 = tpu.matmul %25, %77, %cst_39 {dimension_numbers = #tpu.dot_dimension_numbers<[1], [1], [0], [0], [0, 0, 1, 0], [], []>} : vector<1x32xf32>, vector<8x32xf32>, vector<1x8xf32> -> vector<1x8xf32>
      %cst_40 = arith.constant 14.2857141 : f32
      %79 = vector.broadcast %cst_40 : f32 to vector<1x8xf32>
      %80 = arith.mulf %78, %79 : vector<1x8xf32>
      %81 = vector.broadcast %63 : vector<1x1xf32> to vector<1x8xf32>
      %82 = arith.subf %80, %81 : vector<1x8xf32>
      %83 = math.exp %82 : vector<1x8xf32>
      %84 = vector.broadcast %64 : vector<1x1xf32> to vector<1x8xf32>
      %85 = arith.divf %83, %84 : vector<1x8xf32>
      %c0_41 = arith.constant 0 : index
      %c0_42 = arith.constant 0 : index
      %86 = vector.load %arg4[%c0_41, %c0_42] : memref<1x16xf32, #tpu.memory_space<vmem>>, vector<1x16xf32>
      %87 = vector.broadcast %66 : f32 to vector<1x16xf32>
      %88 = arith.subf %87, %86 : vector<1x16xf32>
      %89 = math.absf %88 : vector<1x16xf32>
      %cst_43 = arith.constant dense<0xFF800000> : vector<1xf32>
      %90 = vector.multi_reduction <maximumf>, %89, %cst_43 [1] : vector<1x16xf32> to vector<1xf32>
      %91 = vector.shape_cast %90 : vector<1xf32> to vector<1x1xf32>
      %cst_44 = arith.constant 9.99999993E-9 : f32
      %92 = vector.broadcast %cst_44 : f32 to vector<1x1xf32>
      %93 = arith.addf %91, %92 : vector<1x1xf32>
      %cst_45 = arith.constant 1.000000e+00 : f32
      %94 = vector.broadcast %cst_45 : f32 to vector<1x1xf32>
      %95 = arith.divf %94, %93 : vector<1x1xf32>
      %96 = vector.broadcast %95 : vector<1x1xf32> to vector<1x16xf32>
      %97 = arith.mulf %89, %96 : vector<1x16xf32>
      %cst_46 = arith.constant 0.000000e+00 : f32
      %98 = vector.broadcast %cst_46 : f32 to vector<1x16xf32>
      %99 = arith.subf %98, %97 : vector<1x16xf32>
      %cst_47 = arith.constant 14.2857141 : f32
      %100 = vector.broadcast %cst_47 : f32 to vector<1x16xf32>
      %101 = arith.mulf %99, %100 : vector<1x16xf32>
      %102 = math.exp %101 : vector<1x16xf32>
      %cst_48 = arith.constant dense<0xFF800000> : vector<1xf32>
      %103 = vector.multi_reduction <maximumf>, %102, %cst_48 [1] : vector<1x16xf32> to vector<1xf32>
      %104 = vector.shape_cast %103 : vector<1xf32> to vector<1x1xf32>
      %105 = vector.broadcast %104 : vector<1x1xf32> to vector<1x16xf32>
      %106 = arith.subf %102, %105 : vector<1x16xf32>
      %107 = math.exp %106 : vector<1x16xf32>
      %cst_49 = arith.constant dense<0.000000e+00> : vector<1xf32>
      %108 = vector.multi_reduction <add>, %107, %cst_49 [1] : vector<1x16xf32> to vector<1xf32>
      %109 = vector.shape_cast %108 : vector<1xf32> to vector<1x1xf32>
      %c0_50 = arith.constant 0 : index
      %c0_51 = arith.constant 0 : index
      %110 = vector.load %arg7[%c0_50, %c0_51] : memref<1x8xf32, #tpu.memory_space<vmem>>, vector<1x8xf32>
      %111 = vector.broadcast %66 : f32 to vector<1x8xf32>
      %112 = arith.subf %111, %110 : vector<1x8xf32>
      %113 = math.absf %112 : vector<1x8xf32>
      %114 = vector.broadcast %95 : vector<1x1xf32> to vector<1x8xf32>
      %115 = arith.mulf %113, %114 : vector<1x8xf32>
      %cst_52 = arith.constant 0.000000e+00 : f32
      %116 = vector.broadcast %cst_52 : f32 to vector<1x8xf32>
      %117 = arith.subf %116, %115 : vector<1x8xf32>
      %cst_53 = arith.constant 14.2857141 : f32
      %118 = vector.broadcast %cst_53 : f32 to vector<1x8xf32>
      %119 = arith.mulf %117, %118 : vector<1x8xf32>
      %120 = math.exp %119 : vector<1x8xf32>
      %121 = vector.broadcast %104 : vector<1x1xf32> to vector<1x8xf32>
      %122 = arith.subf %120, %121 : vector<1x8xf32>
      %123 = math.exp %122 : vector<1x8xf32>
      %124 = vector.broadcast %109 : vector<1x1xf32> to vector<1x8xf32>
      %125 = arith.divf %123, %124 : vector<1x8xf32>
      %cst_54 = arith.constant 5.000000e-01 : f32
      %126 = vector.broadcast %cst_54 : f32 to vector<1x8xf32>
      %127 = arith.mulf %126, %85 : vector<1x8xf32>
      %cst_55 = arith.constant 5.000000e-01 : f32
      %128 = vector.broadcast %cst_55 : f32 to vector<1x8xf32>
      %129 = arith.mulf %128, %125 : vector<1x8xf32>
      %130 = arith.addf %127, %129 : vector<1x8xf32>
      %cst_56 = arith.constant 9.99999993E-9 : f32
      %131 = vector.broadcast %cst_56 : f32 to vector<1x8xf32>
      %132 = arith.addf %130, %131 : vector<1x8xf32>
      %133 = math.log %132 : vector<1x8xf32>
      %c0_57 = arith.constant 0 : index
      %c0_58 = arith.constant 0 : index
      %134 = vector.load %arg5[%c0_57, %c0_58] : memref<1x16xf32, #tpu.memory_space<vmem>>, vector<1x16xf32>
      %135 = vector.broadcast %65 : f32 to vector<1x16xf32>
      %136 = arith.subf %135, %134 : vector<1x16xf32>
      %cst_59 = arith.constant dense<0xFF800000> : vector<1xf32>
      %137 = vector.multi_reduction <maximumf>, %136, %cst_59 [1] : vector<1x16xf32> to vector<1xf32>
      %138 = vector.shape_cast %137 : vector<1xf32> to vector<1x1xf32>
      %cst_60 = arith.constant 9.99999993E-9 : f32
      %139 = vector.broadcast %cst_60 : f32 to vector<1x1xf32>
      %140 = arith.addf %138, %139 : vector<1x1xf32>
      %cst_61 = arith.constant 1.000000e+00 : f32
      %141 = vector.broadcast %cst_61 : f32 to vector<1x1xf32>
      %142 = arith.divf %141, %140 : vector<1x1xf32>
      %143 = vector.broadcast %142 : vector<1x1xf32> to vector<1x16xf32>
      %144 = arith.mulf %136, %143 : vector<1x16xf32>
      %cst_62 = arith.constant 0.000000e+00 : f32
      %145 = vector.broadcast %cst_62 : f32 to vector<1x16xf32>
      %146 = arith.subf %145, %144 : vector<1x16xf32>
      %147 = math.exp %146 : vector<1x16xf32>
      %148 = math.absf %147 : vector<1x16xf32>
      %cst_63 = arith.constant dense<0.000000e+00> : vector<1xf32>
      %149 = vector.multi_reduction <add>, %148, %cst_63 [1] : vector<1x16xf32> to vector<1xf32>
      %150 = vector.shape_cast %149 : vector<1xf32> to vector<1x1xf32>
      %cst_64 = arith.constant 9.99999996E-13 : f32
      %151 = vector.broadcast %cst_64 : f32 to vector<1x1xf32>
      %152 = arith.maximumf %150, %151 : vector<1x1xf32>
      %cst_65 = arith.constant 1.000000e+00 : f32
      %153 = vector.broadcast %cst_65 : f32 to vector<1x1xf32>
      %154 = arith.divf %153, %152 : vector<1x1xf32>
      %c0_66 = arith.constant 0 : index
      %c0_67 = arith.constant 0 : index
      %155 = vector.load %arg8[%c0_66, %c0_67] : memref<1x8xf32, #tpu.memory_space<vmem>>, vector<1x8xf32>
      %156 = vector.broadcast %65 : f32 to vector<1x8xf32>
      %157 = arith.subf %156, %155 : vector<1x8xf32>
      %158 = vector.broadcast %142 : vector<1x1xf32> to vector<1x8xf32>
      %159 = arith.mulf %157, %158 : vector<1x8xf32>
      %cst_68 = arith.constant 0.000000e+00 : f32
      %160 = vector.broadcast %cst_68 : f32 to vector<1x8xf32>
      %161 = arith.subf %160, %159 : vector<1x8xf32>
      %162 = math.exp %161 : vector<1x8xf32>
      %163 = vector.broadcast %154 : vector<1x1xf32> to vector<1x8xf32>
      %164 = arith.mulf %162, %163 : vector<1x8xf32>
      %165 = arith.mulf %133, %164 : vector<1x8xf32>
      %cst_69 = arith.constant dense<0.000000e+00> : vector<1xf32>
      %166 = vector.multi_reduction <add>, %165, %cst_69 [1] : vector<1x8xf32> to vector<1xf32>
      %167 = vector.shape_cast %166 : vector<1xf32> to vector<1x1xf32>
      %cst_70 = arith.constant 0.000000e+00 : f32
      %168 = vector.broadcast %cst_70 : f32 to vector<1x1xf32>
      %169 = arith.subf %168, %167 : vector<1x1xf32>
      %170 = vector.broadcast %66 : f32 to vector<1x8xf32>
      %171 = arith.subf %110, %170 : vector<1x8xf32>
      %172 = arith.mulf %171, %171 : vector<1x8xf32>
      %cst_71 = arith.constant dense<0.000000e+00> : vector<1xf32>
      %173 = vector.multi_reduction <add>, %172, %cst_71 [1] : vector<1x8xf32> to vector<1xf32>
      %174 = vector.shape_cast %173 : vector<1xf32> to vector<1x1xf32>
      %cst_72 = arith.constant 8.000000e+00 : f32
      %175 = vector.broadcast %cst_72 : f32 to vector<1x1xf32>
      %176 = arith.divf %174, %175 : vector<1x1xf32>
      %c0_73 = arith.constant 0 : index
      %c0_74 = arith.constant 0 : index
      %177 = vector.load %arg13[%c0_73, %c0_74] : memref<1x1xf32, #tpu.memory_space<vmem>>, vector<1x1xf32>
      %178 = math.sqrt %177 : vector<1x1xf32>
      %cst_75 = arith.constant 9.99999974E-5 : f32
      %179 = vector.broadcast %cst_75 : f32 to vector<1x1xf32>
      %180 = arith.mulf %179, %178 : vector<1x1xf32>
      %cst_76 = arith.constant 1.000000e-01 : f32
      %181 = vector.broadcast %cst_76 : f32 to vector<1x1xf32>
      %182 = arith.mulf %181, %176 : vector<1x1xf32>
      %183 = arith.addf %169, %182 : vector<1x1xf32>
      %184 = arith.addf %183, %180 : vector<1x1xf32>
      %c0_77 = arith.constant 0 : index
      %c0_78 = arith.constant 0 : index
      %185 = vector.load %arg10[%c0_77, %c0_78] : memref<1x1xf32, #tpu.memory_space<vmem>>, vector<1x1xf32>
      tpu.vector_store %arg10[%c0_77, %c0_78], %184 {strides = array<i32>} : memref<1x1xf32, #tpu.memory_space<vmem>>, vector<1x1xf32>,
    } else {
    }
    return
  }
  func.func @transform_0(%arg0: i32, %arg1: memref<1xi32, #tpu.memory_space<smem>>) -> (i32, i32) {
    %c0_i32 = arith.constant 0 : i32
    %c0_i32_0 = arith.constant 0 : i32
    return %arg0, %c0_i32 : i32, i32
  }
  func.func @transform_1(%arg0: i32, %arg1: memref<1xi32, #tpu.memory_space<smem>>) -> (i32, i32, i32) {
    %c0 = arith.constant 0 : index
    %0 = memref.load %arg1[%c0] : memref<1xi32, #tpu.memory_space<smem>>
    %c0_i32 = arith.constant 0 : i32
    %c0_i32_0 = arith.constant 0 : i32
    %c0_i32_1 = arith.constant 0 : i32
    return %0, %c0_i32, %c0_i32_0 : i32, i32, i32
  }
  func.func @transform_2(%arg0: i32, %arg1: memref<1xi32, #tpu.memory_space<smem>>) -> (i32, i32) {
    %c0_i32 = arith.constant 0 : i32
    %c0_i32_0 = arith.constant 0 : i32
    %c0_i32_1 = arith.constant 0 : i32
    return %c0_i32, %c0_i32_0 : i32, i32
  }
  func.func @transform_3(%arg0: i32, %arg1: memref<1xi32, #tpu.memory_space<smem>>) -> (i32, i32) {
    %c0_i32 = arith.constant 0 : i32
    %c0_i32_0 = arith.constant 0 : i32
    %c0_i32_1 = arith.constant 0 : i32
    return %c0_i32, %c0_i32_0 : i32, i32
  }
  func.func @transform_4(%arg0: i32, %arg1: memref<1xi32, #tpu.memory_space<smem>>) -> (i32, i32) {
    %c0_i32 = arith.constant 0 : i32
    %c0_i32_0 = arith.constant 0 : i32
    %c0_i32_1 = arith.constant 0 : i32
    return %c0_i32, %c0_i32_0 : i32, i32
  }
  func.func @transform_5(%arg0: i32, %arg1: memref<1xi32, #tpu.memory_space<smem>>) -> (i32, i32) {
    %c0_i32 = arith.constant 0 : i32
    %c0_i32_0 = arith.constant 0 : i32
    %c0_i32_1 = arith.constant 0 : i32
    return %c0_i32, %c0_i32_0 : i32, i32
  }
  func.func @transform_6(%arg0: i32, %arg1: memref<1xi32, #tpu.memory_space<smem>>) -> (i32, i32) {
    %c0_i32 = arith.constant 0 : i32
    %c0_i32_0 = arith.constant 0 : i32
    %c0_i32_1 = arith.constant 0 : i32
    return %c0_i32, %c0_i32_0 : i32, i32
  }
  func.func @transform_7(%arg0: i32, %arg1: memref<1xi32, #tpu.memory_space<smem>>) -> i32 {
    %c0_i32 = arith.constant 0 : i32
    %c0_i32_0 = arith.constant 0 : i32
    return %c0_i32 : i32
  }
  func.func @transform_8(%arg0: i32, %arg1: memref<1xi32, #tpu.memory_space<smem>>) -> (i32, i32) {
    %c0_i32 = arith.constant 0 : i32
    %c0_i32_0 = arith.constant 0 : i32
    %c0_i32_1 = arith.constant 0 : i32
    return %c0_i32, %c0_i32_0 : i32, i32
  }
}

</mosaic_0001>

<bundles_post_ra>
// kernel: tpu_custom_call.1
= control target key start
LH: loop header
LB: loop body
LE: loop exit
PB: predicated region body
PF: predicated region fallthrough
CT: control target
= control target key end

     0   :  { %s1540_s0 = inlined_call_operand.<no memory space> [shape: s32[1], index: 0, kind: input, shape index: {}]   ;;  %s1541_s1 = inlined_call_operand.hbm [shape: f32[16,32], index: 1, kind: input, shape index: {}]   ;;  %s1542_s2 = inlined_call_operand.hbm [shape: f32[16,1,32], index: 2, kind: input, shape index: {}]   ;;  %s1543_s3 = inlined_call_operand.vmem [shape: f32[1,16], index: 3, kind: input, shape index: {}]   ;;  %s1544_s4 = inlined_call_operand.vmem [shape: f32[1,16], index: 4, kind: input, shape index: {}]   ;;  %s1545_s5 = inlined_call_operand.hbm [shape: f32[8,32], index: 5, kind: input, shape index: {}]   ;;  %s1546_s6 = inlined_call_operand.vmem [shape: f32[1,8], index: 6, kind: input, shape index: {}]   ;;  %s1547_s7 = inlined_call_operand.vmem [shape: f32[1,8], index: 7, kind: input, shape index: {}]   ;;  %s1548_s8 = inlined_call_operand.vmem [shape: f32[2], index: 8, kind: input, shape index: {}]   ;;  %s1549_s9 = inlined_call_operand.hbm [shape: f32[1,1], index: 9, kind: output, shape index: {}]  }
   0x1   :  { %14 = sst [smem:[#allocation6]] %s1540_s0 }
   0x2   :  { %15 = vsyncpa [#allocation8], 0 }
   0x3   :  { %17 = vsyncpa [#allocation8 + $0x1], 0 }
   0x4   :  { %18 = vsyncpa [#allocation12], 0 }
   0x5   :  { %19 = vsyncpa [#allocation10], 0 }
   0x6   :  { %20 = vsyncpa [#allocation9], 0  ;;  %s1304_s11 = smov 0   ;;  %s1306_s12 = smov 0  }
   0x7   :  { %s1308_s13 = smov 0   ;;  %s1310_s14 = smov 0  }
   0x8   :  { %s1312_s15 = smov 0   ;;  %s1314_s16 = smov 0  }
   0x9 LB: > { %s1333_s0 = sadd.s32 4294967295, %s1240_s16   ;;  %s56_s17 = sld [smem:[#allocation6]]  ;;  %s1240_s16 = sphi %s1314_s16, %s1561_s16   ;;  %s1236_s15 = sphi %s1312_s15, %s1560_s15   ;;  %s1232_s14 = sphi %s1310_s14, %s1559_s14   ;;  %s1228_s13 = sphi %s1308_s13, %s1558_s13   ;;  %s1224_s12 = sphi %s1306_s12, %s1526_s12   ;;  %s1220_s11 = sphi %s1304_s11, %s1557_s11  }
   0xa   : > { %p47_p0 = scmp.eq.s32.totalorder %s1333_s0, 0  ;;  %p74_p1 = scmp.ne.s32.totalorder %s1224_s12, %s1220_s11 }
   0xb   : > { %p863_p2 = scmp.ge.s32.totalorder %s1240_s16, 1  ;;  %p232_p3 = scmp.lt.s32.totalorder %s1240_s16, 3 }
   0xc   : > { %p1341_p4 = por %p74_p1, %p47_p0  ;;  %s1242_s19 = smov [#allocation11]  }
   0xd   : > { %s248_s20 = sshll.u32 %s1242_s19, 4  ;;  %p1345_p5 = pnand %p863_p2, %p232_p3  ;;  %s249_s20 = int_to_ptr.vmem [resolvable:$true] %s248_s20 }
   0xe   : > { %p864_p7 = scmp.ne.s32.totalorder %s1333_s0, 0  ;;  %s264_s29 = sshll.u32 %s1545_s5, 4  ;;  %s265_s29 = int_to_ptr.hbm [resolvable:$true] %s264_s29 }
   0xf   : > { %s244_s24 = scalar_lea.hbm %s1542_s2, %s56_s17  ;;  %p901_p6 = pneg %p1345_p5 }
  0x10   : > { %s246_s25 = sshll.u32 %s244_s24, 4  ;;  %s1044_s19 = scalar_lea.hbm %s1542_s2, 16  ;;  %s247_s25 = int_to_ptr.hbm [resolvable:$true] %s246_s25 }
  0x11   : > { %p1360_p8 = pnand %p901_p6, %p1341_p4  ;;  %s1037_s30 = sshra.s32 %s247_s25, 4  ;;  %s1038_s30 = int_to_ptr.hbm [resolvable:$true] %s1037_s30 }
  0x12   : > { %s1039_s10 = scalar_lea.hbm %s1038_s30, 1  ;;  %p1045_p13 = scmp.lt.s32.totalorder %s1038_s30, %s1542_s2 }
  0x13   : > { %p1040_p9 = scmp.ne.s32.totalorder %s1038_s30, %s1039_s10  ;;  %p1041_p10 = pneg %p1360_p8 }
  0x14   : > { %p1046_p1 = scmp.lt.s32.totalorder %s1044_s19, %s1039_s10 }
  0x15   : > { %p1042_p11 = pnand %p1041_p10, %p1040_p9 }
  0x16   : > { %p1047_p2 = por %p1046_p1, %p1045_p13 }
  0x17   : > { %p1043_p12 = pneg %p1042_p11 }
  0x19   : > { %p1048_p3 = pnand %p1047_p2, %p1043_p12 }
  0x1b   : > { %1051 = shalt.err (!%p1048_p3)
}
  0x1c   : > { %904 = dma.hbm_to_vmem [thread:$0]  (!%p1360_p8), %s247_s25, 16, %s249_s20, [#allocation12]  }
  0x1d   : > { %p905_p9 = pnand %p901_p6, %p47_p0  ;;  %s1243_s24 = smov [#allocation13]  }
  0x1e   : > { %s266_s27 = sshll.u32 %s1243_s24, 4  ;;  %s282_s30 = sshll.u32 %s1548_s8, 4  ;;  %s267_s27 = int_to_ptr.vmem [resolvable:$true] %s266_s27  ;;  %s283_s30 = int_to_ptr.vmem [resolvable:$true] %s282_s30 }
  0x1f   : > { %907 = dma.hbm_to_vmem [thread:$0]  (!%p905_p9), %s265_s29, 128, %s267_s27, [#allocation12]  }
  0x20   : > { %s1244_s20 = smov [#allocation14]   ;;  %s1386_s25 = sadd.s32 1, %s1240_s16  }
  0x21   : > { %910 = dma.vmem_to_smem (!%p905_p9), %s283_s30, 16, %s1244_s20, [#allocation10]  }
  0x22   : > { %s30_s10 = ssub.s32 %s1240_s16, %s1386_s25  ;;  %s33_s11 = sadd.s32 1, %s1236_s15 }
  0x23   : > { %p31_p6 = scmp.eq.s32.totalorder %s30_s10, 0  ;;  %p40_p8 = scmp.ne.s32.totalorder %s1236_s15, %s1232_s14 }
  0x24   : > { %p41_p10 = scmp.eq.s32.totalorder %s1240_s16, 0  ;;  %p46_p11 = scmp.ne.s32.totalorder %s1232_s14, %s1228_s13 }
  0x25   : > { %s1397_s17 = scalar_select %p31_p6, %s1236_s15, %s33_s11  }
  0x26   : > { %p1401_p12 = por %p47_p0, %p46_p11  ;;  %p917_p13 = scmp.lt.s32.totalorder %s1240_s16, 2 }
  0x27   : > { %s293_s29 = sand.u32 1, %s1236_s15   ;;  %s868_s22 = sshll.u32 %s1240_s16, 3 }
  0x28   : > { %p42_p1 = por %p41_p10, %p40_p8  ;;  %s867_s23 = sshll.u32 %s293_s29, 3 }
  0x29   : > { %s301_s26 = scalar_lea.hbm %s1541_s1, %s868_s22  ;;  %s297_s30 = scalar_lea.vmem [#allocation7], %s867_s23 }
  0x2a   : > { %s303_s28 = sshll.u32 %s301_s26, 4  ;;  %s305_s20 = sshll.u32 %s297_s30, 4  ;;  %s304_s28 = int_to_ptr.hbm [resolvable:$true] %s303_s28  ;;  %s306_s20 = int_to_ptr.vmem [resolvable:$true] %s305_s20 }
  0x2b   : > { %p1411_p2 = pnand %p917_p13, %p42_p1  ;;  %s294_s10 = scalar_lea.sflag [#allocation8], %s293_s29 }
  0x2c   : > { %s1112_s11 = sshra.s32 %s304_s28, 4  ;;  %s1119_s23 = scalar_lea.hbm %s1541_s1, 16  ;;  %s1113_s11 = int_to_ptr.hbm [resolvable:$true] %s1112_s11 }
  0x2d   : > { %s1114_s16 = scalar_lea.hbm %s1113_s11, 8  ;;  %p1116_p9 = pneg %p1411_p2 }
  0x2e   : > { %p1115_p3 = scmp.ne.s32.totalorder %s1113_s11, %s1114_s16  ;;  %p1120_p10 = scmp.lt.s32.totalorder %s1113_s11, %s1541_s1 }
  0x2f   : > { %p1121_p11 = scmp.lt.s32.totalorder %s1119_s23, %s1114_s16 }
  0x30   : > { %p1117_p6 = pnand %p1116_p9, %p1115_p3 }
  0x31   : > { %p1122_p13 = por %p1121_p11, %p1120_p10 }
  0x32   : > { %p1118_p8 = pneg %p1117_p6 }
  0x34   : > { %p1123_p1 = pnand %p1122_p13, %p1118_p8 }
  0x36   : > { %1126 = shalt.err (!%p1123_p1)
}
  0x37   : > { %914 = dma.hbm_to_vmem [thread:$0]  (!%p1411_p2), %s304_s28, 128, %s306_s20, %s294_s10  }
  0x38   : > { %314 = sbr.rel (%p1345_p5) target bundleno = 1317 (0x525), region = 52  ;;  %s316_s29 = sand.u32 (!%p1345_p5), 1, %s1232_s14  }
  0x39   : > { %s870_s30 = sshll.u32 (!%p1345_p5), %s316_s29, 3  ;;  %s317_s22 = scalar_lea.sflag (!%p1345_p5), [#allocation8], %s316_s29 }
  0x3a   : > { %s320_s24 = scalar_lea.vmem (!%p1345_p5), [#allocation7], %s870_s30 }
  0x3d   : > { %1199 = dma.done.wait (%p1401_p12), %s317_s22, 128  }
  0x3e   : > { %1201 = vsyncadd (%p1401_p12), %s317_s22, 4294967168 }
  0x3f   : > { %1203 = dma.done.wait (%p1341_p4), [#allocation12], 16  }
  0x40   : > { %1205 = vsyncadd (%p1341_p4), [#allocation12], 4294967280 }
  0x41   : > { %1207 = dma.done.wait (%p47_p0), [#allocation12], 128  }
  0x42   : > { %1209 = vsyncadd (%p47_p0), [#allocation12], 4294967168 }
  0x43   : > { %1211 = dma.done.wait (%p47_p0), [#allocation10], 16  }
  0x44   : > { %1213 = vsyncadd (%p47_p0), [#allocation10], 4294967280 }
  0x45   : > { %341 = sfence }
  0x46   : > { %369 = sbr.rel (%p864_p7) target bundleno = 79 (0x4f), region = 72 }
  0x4b   : > { %vm370_vm0 = vcmask 0   ;;  %v1245_v0 = vmov -1e+30   ;;  %v1246_v1 = vmov 0.0  }
  0x4c   : > { %371 = vst.msk [vmem:[#allocation2] sm:$0x1] %vm370_vm0, %v1245_v0 }
  0x4d   : > { %372 = vst.msk [vmem:[#allocation3] sm:$0x1] %vm370_vm0, %v1246_v1 }
  0x4e   : > { %373 = vst.msk [vmem:[#allocation4] sm:$0x1] %vm370_vm0, %v1246_v1 }
  0x4f PF: > { %v374_v2 = vld [vmem:[%s320_s24] sm:$0xff]  ;;  %vm376_vm1 = vcmask 261120   ;;  %v1446_v4 = vld [vmem:[#allocation11] sm:$0x1]  ;;  %vm411_vm2 = vcmask 253952   ;;  %vm502_vm15 = vcmask 0   ;;  %v472_v0 = vlaneseq }
  0x50   : > { %v375_v3 = vmul.f32 %v374_v2, %v374_v2  ;;  %v410_v6 = vmul.f32 %v1446_v4, %v1446_v4  ;;  %s876_s18 = sshll.u32 %s1333_s0, 3  ;;  %p877_p0 = scmp.ne.s32.totalorder %s1333_s0, 1 }
  0x51   : > { %v473_v1 = vand.u32 127, %v472_v0  ;;  %s878_s21 = sld [smem:[#allocation14 + $0x1]] (!%p877_p0) }
  0x52   : > { %v377_v5 = vsel %vm376_vm1, %v375_v3, 0.0  ;;  %v412_v7 = vsel %vm411_vm2, %v410_v6, 0.0  ;;  %vm479_vm2 = vcmask 57344   ;;  %s1468_s19 = sld [smem:[#allocation14]] (!%p877_p0) }
  0x53   : > { %378 = vadd.xlane.f32.xlu0 %v377_v5 }
  0x55   : > { %v505_v61 = vld [vmem:[#allocation4] sm:$0x1] }
  0x5b   : > { %413 = vadd.xlane.f32.xlu0 %v412_v7 }
  0xc6   : > { %v379_v8 = vpop.xlane.xlu0 %378 }
  0xc7   : > { %989 = vrsqrt.f32 %v379_v8  ;;  %vm387_vm3 = vcmp.eq.f32.partialorder %v379_v8, inf  ;;  %v390_v20 = vand.u32 2147483648, %v379_v8  ;;  %vm389_vm4 = vcmp.eq.f32.partialorder %v379_v8, 0.0 }
  0xcd   : > { %v990_v9 = vpop.eup %989 }
  0xce   : > { %v381_v10 = vmul.f32 %v990_v9, %v379_v8  ;;  %v414_v11 = vpop.xlane.xlu0 %413 }
  0xcf   : > { %991 = vrsqrt.f32 %v414_v11  ;;  %vm422_vm5 = vcmp.eq.f32.partialorder %v414_v11, inf  ;;  %v425_v28 = vand.u32 2147483648, %v414_v11  ;;  %vm424_vm6 = vcmp.eq.f32.partialorder %v414_v11, 0.0 }
  0xd0   : > { %v382_v12 = vmul.f32 %v990_v9, %v381_v10 }
  0xd2   : > { %v383_v13 = vmul.f32 0.5, %v382_v12 }
  0xd4   : > { %v384_v14 = vsub.f32 1.5, %v383_v13 }
  0xd5   : > { %v992_v15 = vpop.eup %991 }
  0xd6   : > { %v385_v16 = vmul.f32 %v990_v9, %v384_v14  ;;  %v416_v17 = vmul.f32 %v992_v15, %v414_v11  ;;  %v478_v9 = vld [vmem:[#allocation2] sm:$0x1] }
  0xd8   : > { %v386_v18 = vmul.f32 %v385_v16, %v379_v8  ;;  %v417_v19 = vmul.f32 %v992_v15, %v416_v17 }
  0xda   : > { %v388_v21 = vsel %vm387_vm3, %v379_v8, %v386_v18  ;;  %v418_v22 = vmul.f32 0.5, %v417_v19 }
  0xdb   : > { %v391_v23 = vsel %vm389_vm4, %v390_v20, %v388_v21  ;;  %v484_v21 = vld [vmem:[#allocation3] sm:$0x1] }
  0xdc   : > { %v419_v24 = vsub.f32 1.5, %v418_v22  ;;  %v392_v25 = vmax.f32 %v391_v23, 1e-12 }
  0xde   : > { %v420_v26 = vmul.f32 %v992_v15, %v419_v24  ;;  %993 = vrcp.f32 %v392_v25  ;;  %v404_v35 = vand.u32 2147483648, %v392_v25  ;;  %v402_v37 = vand.u32 2147483647, %v392_v25 }
  0xdf   : > { %vm398_vm8 = vweird.f32 %v392_v25 }
  0xe0   : > { %v421_v27 = vmul.f32 %v420_v26, %v414_v11  ;;  %v405_v40 = vor.u32 1.1754944e-38, %v404_v35  ;;  %vm403_vm10 = vcmp.eq.f32.partialorder %v402_v37, 8.507059e+37 }
  0xe2   : > { %v423_v29 = vsel %vm422_vm5, %v414_v11, %v421_v27 }
  0xe3   : > { %v426_v30 = vsel %vm424_vm6, %v425_v28, %v423_v29 }
  0xe4   : > { %v994_v31 = vpop.eup %993  ;;  %v427_v32 = vmax.f32 %v426_v30, 1e-12 }
  0xe5   : > { %v394_v33 = vmul.f32 %v994_v31, %v392_v25  ;;  %vm399_vm7 = vweird.f32 %v994_v31 }
  0xe6   : > { %995 = vrcp.f32 %v427_v32  ;;  %vm400_vm9 = vmor %vm398_vm8, %vm399_vm7  ;;  %v439_v47 = vand.u32 2147483648, %v427_v32  ;;  %v437_v50 = vand.u32 2147483647, %v427_v32  ;;  %vm433_vm12 = vweird.f32 %v427_v32 }
  0xe7   : > { %v395_v34 = vsub.f32 1.0, %v394_v33 }
  0xe8   : > { %v440_v53 = vor.u32 1.1754944e-38, %v439_v47  ;;  %vm438_vm14 = vcmp.eq.f32.partialorder %v437_v50, 8.507059e+37 }
  0xe9   : > { %v396_v36 = vmul.f32 %v994_v31, %v395_v34 }
  0xeb   : > { %v397_v38 = vadd.f32 %v994_v31, %v396_v36 }
  0xec   : > { %v996_v39 = vpop.eup %995 }
  0xed   : > { %v401_v41 = vsel %vm400_vm9, %v994_v31, %v397_v38  ;;  %v429_v42 = vmul.f32 %v996_v39, %v427_v32  ;;  %vm434_vm11 = vweird.f32 %v996_v39 }
  0xee   : > { %v406_v43 = vsel %vm403_vm10, %v405_v40, %v401_v41  ;;  %vm435_vm13 = vmor %vm433_vm12, %vm434_vm11 }
  0xef   : > { %v408_v44 = vmul.f32 %v406_v43, %v374_v2  ;;  %v506_v45 = vmul.f32 %v406_v43, %v379_v8  ;;  %v430_v46 = vsub.f32 1.0, %v429_v42  ;;  %v474_v2 = vstv %s876_s18 }
  0xf0   : > { %v475_v3 = vadd.s32 %v474_v2, %v473_v1  ;;  %v1247_v8 = vmov 0  }
  0xf1   : > { %874 = vmatpush.xpose.msk.msra.mxu0 %vm376_vm1, %v408_v44  ;;  %v507_v48 = vmul.f32 %v506_v45, %v406_v43  ;;  %v431_v49 = vmul.f32 %v996_v39, %v430_v46  ;;  %987 = vset.pattern.permute.xlu1 %v1247_v8 }
  0xf2   : > { %vm476_vm0 = vcmp.lt.s32.totalorder %v475_v3, 16  ;;  %988 = vset.pattern.permute.xlu0 %v1247_v8 }
  0xf3   : > { %v508_v51 = vrot.slane %v507_v48, 4  ;;  %v432_v52 = vadd.f32 %v996_v39, %v431_v49 }
  0xf5   : > { %v509_v54 = vadd.f32 %v508_v51, %v507_v48  ;;  %v436_v55 = vsel %vm435_vm13, %v996_v39, %v432_v52 }
  0xf6   : > { %v441_v56 = vsel %vm438_vm14, %v440_v53, %v436_v55 }
  0xf7   : > { %v510_v57 = vrot.slane %v509_v54, 2  ;;  %v1453_v58 = vmul.f32 %v441_v56, %v1446_v4 }
  0xf9   : > { %v511_v59 = vadd.f32 %v510_v57, %v509_v54  ;;  %875 = vmatmul.msk.f32.vlgmr.msra.gmra.mxu0 %vm376_vm1, %v1453_v58 }
  0xfb   : > { %v512_v60 = vrot.slane %v511_v59, 1 }
  0xfd   : > { %v513_v62 = vadd.f32 %v512_v60, %v511_v59 }
  0xff   : > { %v514_v63 = vadd.f32 %v513_v62, %v505_v61 }
 0x101   : > { %515 = vst.msk [vmem:[#allocation4] sm:$0x1] %vm502_vm15, %v514_v63 }
 0x176   : > { %v467_v5 = vpop.f32.mrf.mxu0 }
 0x177   : > { %v470_v4 = vmul.f32 14.285714, %v467_v5 }
 0x179   : > { %v477_v6 = vsel %vm476_vm0, %v470_v4, -1e+30 }
 0x17a   : > { %v480_v7 = vsel %vm479_vm2, %v477_v6, -inf }
 0x17b   : > { %481 = vmax.xlane.f32.xlu1 %v480_v7 }
 0x1ee   : > { %v482_v10 = vpop.xlane.xlu1 %481 }
 0x1ef   : > { %v483_v11 = vmax.f32 %v478_v9, %v482_v10 }
 0x1f1   : > { %v485_v12 = vsub.f32 %v478_v9, %v483_v11  ;;  %504 = vst.msk [vmem:[#allocation2] sm:$0x1] %vm502_vm15, %v483_v11  ;;  %491 = vperm.xlu1 %987, %v483_v11  }
 0x1f3   : > { %v486_v19 = vmul.f32 1.442695, %v485_v12 }
 0x263   : > { %v492_v13 = vpop.permute.xlu1 %491 }
 0x264   : > { %v494_v14 = vperm.slane %v492_v13, 0 }
 0x266   : > { %v495_v15 = vsub.f32 %v477_v6, %v494_v14 }
 0x268   : > { %v496_v16 = vmul.f32 1.442695, %v495_v15 }
 0x26a   : > { %997 = vpow2.f32 %v496_v16 }
 0x26b   : > { %999 = vpow2.f32 %v486_v19 }
 0x270   : > { %v998_v17 = vpop.eup %997 }
 0x271   : > { %v498_v18 = vsel %vm479_vm2, %v998_v17, 0.0  ;;  %v1000_v20 = vpop.eup %999 }
 0x272   : > { %499 = vadd.xlane.f32.xlu2 %v498_v18  ;;  %v488_v22 = vmul.f32 %v1000_v20, %v484_v21 }
 0x2e4   : > { %519 = sbr.rel (%p877_p0) target bundleno = 1312 (0x520), region = 76 }
 0x2e5   : > { %v500_v23 = vpop.xlane.xlu2 %499 }
 0x2e6   : > { %v501_v24 = vadd.f32 %v500_v23, %v488_v22 }
 0x2e8   : > { %503 = vst.msk [vmem:[#allocation3] sm:$0x1] %vm502_vm15, %v501_v24 }
 0x2e9   : > { %v1464_v25 = vld [vmem:[#allocation13] sm:$0xff]  ;;  %v612_v28 = vld [vmem:[%s1543_s3] sm:$0x1]  ;;  %v1477_v30 = vstv %s878_s21  ;;  %v683_v32 = vstv %s1468_s19  ;;  %vm616_vm3 = vcmask 122880   ;;  %v1248_v7 = vmov 0  }
 0x2ea   : > { %v525_v26 = vmul.f32 %v1464_v25, %v1464_v25  ;;  %v682_v29 = vld [vmem:[%s1544_s4] sm:$0x1]  ;;  %v614_v31 = vsub.f32 %v1477_v30, %v612_v28  ;;  %1002 = vset.pattern.permute.xlu0 %v1248_v7  ;;  %1001 = vset.pattern.permute.xlu2 %v1248_v7 }
 0x2eb   : > { %v1481_v33 = vsub.f32 %v683_v32, %v682_v29  ;;  %v728_v51 = vld [vmem:[%s1547_s7] sm:$0x1] }
 0x2ec   : > { %v526_v27 = vsel %vm376_vm1, %v525_v26, 0.0  ;;  %v1483_v34 = vand.u32 2147483647, %v614_v31  ;;  %v729_v61 = vsub.f32 %v683_v32, %v728_v51  ;;  %v520_v0 = vld [vmem:[#allocation2] sm:$0x1] }
 0x2ed   : > { %527 = vadd.xlane.f32.xlu0 %v526_v27  ;;  %v685_v35 = vsel %vm616_vm3, %v1481_v33, -inf }
 0x2ee   : > { %v617_v36 = vsel %vm616_vm3, %v1483_v34, -inf  ;;  %686 = vmax.xlane.f32.xlu1 %v685_v35 }
 0x2ef   : > { %v521_v1 = vld [vmem:[#allocation3] sm:$0x1] }
 0x2f0   : > { %593 = vperm.xlu2 %1001, %v521_v1  }
 0x2f5   : > { %618 = vmax.xlane.f32.xlu0 %v617_v36 }
 0x309   : > { %584 = vperm.xlu0 %1002, %v520_v0  }
 0x360   : > { %v528_v37 = vpop.xlane.xlu0 %527 }
 0x361   : > { %1003 = vrsqrt.f32 %v528_v37  ;;  %v687_v39 = vpop.xlane.xlu1 %686  ;;  %vm536_vm4 = vcmp.eq.f32.partialorder %v528_v37, inf  ;;  %v539_v53 = vand.u32 2147483648, %v528_v37  ;;  %vm538_vm7 = vcmp.eq.f32.partialorder %v528_v37, 0.0 }
 0x362   : > { %v688_v42 = vadd.f32 1e-08, %v687_v39 }
 0x364   : > { %1005 = vrcp.f32 %v688_v42  ;;  %v700_v55 = vand.u32 2147483648, %v688_v42  ;;  %vm694_vm5 = vweird.f32 %v688_v42  ;;  %v698_v57 = vand.u32 2147483647, %v688_v42 }
 0x366   : > { %v701_v6 = vor.u32 1.1754944e-38, %v700_v55  ;;  %vm699_vm10 = vcmp.eq.f32.partialorder %v698_v57, 8.507059e+37 }
 0x367   : > { %v1004_v38 = vpop.eup %1003 }
 0x368   : > { %v530_v40 = vmul.f32 %v1004_v38, %v528_v37  ;;  %v619_v41 = vpop.xlane.xlu0 %618 }
 0x369   : > { %v620_v43 = vadd.f32 1e-08, %v619_v41 }
 0x36a   : > { %v531_v44 = vmul.f32 %v1004_v38, %v530_v40  ;;  %v1006_v47 = vpop.eup %1005 }
 0x36b   : > { %1007 = vrcp.f32 %v620_v43  ;;  %v690_v50 = vmul.f32 %v1006_v47, %v688_v42  ;;  %vm695_vm6 = vweird.f32 %v1006_v47  ;;  %v632_v3 = vand.u32 2147483648, %v620_v43  ;;  %v650_v42 = vld [vmem:[%s1546_s6] sm:$0x1] }
 0x36c   : > { %v532_v45 = vmul.f32 0.5, %v531_v44  ;;  %vm1492_vm8 = vmor %vm694_vm5, %vm695_vm6  ;;  %v630_v8 = vand.u32 2147483647, %v620_v43  ;;  %vm626_vm11 = vweird.f32 %v620_v43 }
 0x36d   : > { %v691_v56 = vsub.f32 1.0, %v690_v50  ;;  %v633_v12 = vor.u32 1.1754944e-38, %v632_v3 }
 0x36e   : > { %v533_v46 = vsub.f32 1.5, %v532_v45  ;;  %vm631_vm13 = vcmp.eq.f32.partialorder %v630_v8, 8.507059e+37 }
 0x36f   : > { %v692_v63 = vmul.f32 %v1006_v47, %v691_v56  ;;  %v740_v56 = vsub.f32 %v650_v42, %v1477_v30 }
 0x370   : > { %v534_v48 = vmul.f32 %v1004_v38, %v533_v46 }
 0x371   : > { %v1008_v49 = vpop.eup %1007  ;;  %v693_v9 = vadd.f32 %v1006_v47, %v692_v63  ;;  %v741_v57 = vmul.f32 %v740_v56, %v740_v56 }
 0x372   : > { %v535_v52 = vmul.f32 %v534_v48, %v528_v37  ;;  %v622_v54 = vmul.f32 %v1008_v49, %v620_v43  ;;  %vm627_vm9 = vweird.f32 %v1008_v49 }
 0x373   : > { %v697_v11 = vsel %vm1492_vm8, %v1006_v47, %v693_v9  ;;  %vm628_vm12 = vmor %vm626_vm11, %vm627_vm9 }
 0x374   : > { %v537_v59 = vsel %vm536_vm4, %v528_v37, %v535_v52  ;;  %v623_v60 = vsub.f32 1.0, %v622_v54  ;;  %v702_v13 = vsel %vm699_vm10, %v701_v6, %v697_v11  ;;  %v594_v54 = vpop.permute.xlu2 %593 }
 0x375   : > { %v540_v62 = vsel %vm538_vm7, %v539_v53, %v537_v59  ;;  %v704_v15 = vmul.f32 %v702_v13, %v1481_v33  ;;  %v1499_v16 = vmul.f32 %v729_v61, %v702_v13  ;;  %v596_v55 = vperm.slane %v594_v54, 0 }
 0x376   : > { %v624_v2 = vmul.f32 %v1008_v49, %v623_v60  ;;  %v541_v5 = vmax.f32 %v540_v62, 1e-12  ;;  %v742_v59 = vsel %vm479_vm2, %v741_v57, 0.0 }
 0x377   : > { %v705_v19 = vsub.f32 0.0, %v704_v15 }
 0x378   : > { %1009 = vrcp.f32 %v541_v5  ;;  %v625_v10 = vadd.f32 %v1008_v49, %v624_v2  ;;  %v553_v27 = vand.u32 2147483648, %v541_v5  ;;  %v551_v29 = vand.u32 2147483647, %v541_v5 }
 0x379   : > { %v706_v23 = vmul.f32 1.442695, %v705_v19  ;;  %vm547_vm0 = vweird.f32 %v541_v5 }
 0x37a   : > { %v629_v14 = vsel %vm628_vm12, %v1008_v49, %v625_v10  ;;  %v554_v33 = vor.u32 1.1754944e-38, %v553_v27  ;;  %vm552_vm5 = vcmp.eq.f32.partialorder %v551_v29, 8.507059e+37  ;;  %v606_v10 = vand.u32 2147483647, %v596_v55 }
 0x37b   : > { %v634_v17 = vsel %vm631_vm13, %v633_v12, %v629_v14  ;;  %1011 = vpow2.f32 %v706_v23  ;;  %v585_v62 = vpop.permute.xlu0 %584 }
 0x37c   : > { %v636_v18 = vmul.f32 %v634_v17, %v1483_v34  ;;  %v587_v2 = vperm.slane %v585_v62, 0  ;;  %vm607_vm7 = vcmp.eq.f32.partialorder %v606_v10, 8.507059e+37 }
 0x37e   : > { %v1010_v20 = vpop.eup %1009  ;;  %v637_v22 = vsub.f32 0.0, %v636_v18 }
 0x37f   : > { %v543_v21 = vmul.f32 %v1010_v20, %v541_v5  ;;  %vm548_vm14 = vweird.f32 %v1010_v20 }
 0x380   : > { %v638_v26 = vmul.f32 14.285714, %v637_v22  ;;  %vm549_vm4 = vmor %vm547_vm0, %vm548_vm14 }
 0x381   : > { %v544_v24 = vsub.f32 1.0, %v543_v21  ;;  %v1012_v37 = vpop.eup %1011 }
 0x382   : > { %v639_v31 = vmul.f32 1.442695, %v638_v26  ;;  %v708_v40 = vand.u32 2147483647, %v1012_v37 }
 0x383   : > { %v545_v28 = vmul.f32 %v1010_v20, %v544_v24 }
 0x384   : > { %1013 = vpow2.f32 %v639_v31  ;;  %v709_v41 = vsel %vm616_vm3, %v708_v40, 0.0 }
 0x385   : > { %v546_v32 = vadd.f32 %v1010_v20, %v545_v28 }
 0x387   : > { %v550_v35 = vsel %vm549_vm4, %v1010_v20, %v546_v32 }
 0x388   : > { %v555_v34 = vsel %vm552_vm5, %v554_v33, %v550_v35  ;;  %v731_v33 = vsub.f32 0.0, %v1499_v16 }
 0x389   : > { %v557_v36 = vmul.f32 %v555_v34, %v1464_v25  ;;  %v651_v25 = vsub.f32 %v1477_v30, %v650_v42  ;;  %v608_v30 = vand.u32 2147483648, %v596_v55 }
 0x38a   : > { %v1014_v38 = vpop.eup %1013 }
 0x38b   : > { %879 = vmatpush.xpose.msk.msra.mxu0 %vm376_vm1, %v557_v36  ;;  %v641_v39 = vsel %vm616_vm3, %v1014_v38, -inf  ;;  %v652_v43 = vand.u32 2147483647, %v651_v25  ;;  %v609_v15 = vor.u32 1.1754944e-38, %v608_v30 }
 0x38c   : > { %642 = vmax.xlane.f32.xlu1 %v641_v39  ;;  %v732_v39 = vmul.f32 1.442695, %v731_v33 }
 0x38d   : > { %v653_v44 = vmul.f32 %v652_v43, %v634_v17 }
 0x38e   : > { %880 = vmatmul.msk.f32.vlgmr.msra.gmra.mxu0 %vm376_vm1, %v1453_v58  ;;  %vm602_vm1 = vweird.f32 %v596_v55 }
 0x38f   : > { %v654_v45 = vsub.f32 0.0, %v653_v44 }
 0x391   : > { %v655_v46 = vmul.f32 14.285714, %v654_v45 }
 0x393   : > { %v656_v47 = vmul.f32 1.442695, %v655_v46 }
 0x394   : > { %710 = vadd.xlane.f32.xlu1 %v709_v41 }
 0x395   : > { %1015 = vpow2.f32 %v656_v47 }
 0x39b   : > { %v1016_v48 = vpop.eup %1015 }
 0x39c   : > { %743 = vadd.xlane.f32.xlu1 %v742_v59 }
 0x3ff   : > { %v643_v49 = vpop.xlane.xlu1 %642 }
 0x400   : > { %v644_v50 = vsub.f32 %v1014_v38, %v643_v49  ;;  %v658_v51 = vsub.f32 %v1016_v48, %v643_v49 }
 0x402   : > { %v645_v58 = vmul.f32 1.442695, %v644_v50  ;;  %v659_v12 = vmul.f32 1.442695, %v658_v51 }
 0x404   : > { %1017 = vpow2.f32 %v645_v58  ;;  %v753_v58 = vld [vmem:[#allocation4] sm:$0x1] }
 0x405   : > { %1019 = vrcp.f32 %v596_v55  ;;  %vm763_vm5 = vcmp.eq.f32.partialorder %v753_v58, 0.0 }
 0x407   : > { %v711_v0 = vpop.xlane.xlu1 %710 }
 0x408   : > { %v712_v3 = vmax.f32 %v711_v0, 1e-12 }
 0x40a   : > { %v1018_v52 = vpop.eup %1017  ;;  %vm718_vm12 = vweird.f32 %v712_v3  ;;  %v724_v41 = vand.u32 2147483648, %v712_v3  ;;  %v722_v25 = vand.u32 2147483647, %v712_v3 }
 0x40b   : > { %v647_v53 = vsel %vm616_vm3, %v1018_v52, 0.0  ;;  %v1020_v60 = vpop.eup %1019  ;;  %v578_v61 = vpop.f32.mrf.mxu0 }
 0x40c   : > { %648 = vadd.xlane.f32.xlu2 %v647_v53  ;;  %v598_v63 = vmul.f32 %v1020_v60, %v596_v55  ;;  %v581_v1 = vmul.f32 14.285714, %v578_v61  ;;  %vm603_vm3 = vweird.f32 %v1020_v60  ;;  %v725_v44 = vor.u32 1.1754944e-38, %v724_v41 }
 0x40d   : > { %vm604_vm6 = vmor %vm602_vm1, %vm603_vm3  ;;  %vm723_vm0 = vcmp.eq.f32.partialorder %v722_v25, 8.507059e+37  ;;  %v1249_v53 = vmov 8.0  }
 0x40e   : > { %v599_v5 = vsub.f32 1.0, %v598_v63  ;;  %v588_v4 = vsub.f32 %v581_v1, %v587_v2 }
 0x40f   : > { %v744_v1 = vpop.xlane.xlu1 %743 }
 0x410   : > { %v600_v7 = vmul.f32 %v1020_v60, %v599_v5  ;;  %v589_v8 = vmul.f32 1.442695, %v588_v4  ;;  %v764_v5 = vand.u32 2147483648, %v753_v58 }
 0x412   : > { %v601_v9 = vadd.f32 %v1020_v60, %v600_v7 }
 0x414   : > { %v605_v18 = vsel %vm604_vm6, %v1020_v60, %v601_v9 }
 0x415   : > { %v610_v24 = vsel %vm607_vm7, %v609_v15, %v605_v18 }
 0x47f   : > { %v649_v6 = vpop.xlane.xlu2 %648 }
 0x480   : > { %1021 = vrcp.f32 %v649_v6  ;;  %v672_v20 = vand.u32 2147483648, %v649_v6  ;;  %v670_v22 = vand.u32 2147483647, %v649_v6  ;;  %vm666_vm9 = vweird.f32 %v649_v6 }
 0x481   : > { %1023 = vrcp.f32 %v712_v3 }
 0x482   : > { %1025 = vpow2.f32 %v589_v8  ;;  %v673_v28 = vor.u32 1.1754944e-38, %v672_v20  ;;  %vm671_vm11 = vcmp.eq.f32.partialorder %v670_v22, 8.507059e+37 }
 0x483   : > { %1027 = vpow2.f32 %v659_v12 }
 0x484   : > { %1029 = vpow2.f32 %v732_v39 }
 0x486   : > { %v1022_v11 = vpop.eup %1021 }
 0x487   : > { %v1024_v13 = vpop.eup %1023  ;;  %v662_v14 = vmul.f32 %v1022_v11, %v649_v6  ;;  %vm667_vm8 = vweird.f32 %v1022_v11 }
 0x488   : > { %v714_v19 = vmul.f32 %v1024_v13, %v712_v3  ;;  %v1026_v23 = vpop.eup %1025  ;;  %vm668_vm10 = vmor %vm666_vm9, %vm667_vm8  ;;  %vm719_vm13 = vweird.f32 %v1024_v13 }
 0x489   : > { %v663_v17 = vsub.f32 1.0, %v662_v14  ;;  %v611_v31 = vmul.f32 %v1026_v23, %v610_v24  ;;  %v1028_v32 = vpop.eup %1027  ;;  %vm720_vm14 = vmor %vm718_vm12, %vm719_vm13 }
 0x48a   : > { %v715_v27 = vsub.f32 1.0, %v714_v19  ;;  %v1030_v46 = vpop.eup %1029 }
 0x48b   : > { %v664_v21 = vmul.f32 %v1022_v11, %v663_v17  ;;  %v676_v37 = vmul.f32 0.5, %v611_v31 }
 0x48c   : > { %v716_v36 = vmul.f32 %v1024_v13, %v715_v27 }
 0x48d   : > { %v665_v26 = vadd.f32 %v1022_v11, %v664_v21 }
 0x48e   : > { %v717_v42 = vadd.f32 %v1024_v13, %v716_v36 }
 0x48f   : > { %v669_v29 = vsel %vm668_vm10, %v1022_v11, %v665_v26 }
 0x490   : > { %v674_v35 = vsel %vm671_vm11, %v673_v28, %v669_v29  ;;  %v721_v45 = vsel %vm720_vm14, %v1024_v13, %v717_v42 }
 0x491   : > { %v675_v34 = vmul.f32 %v1028_v32, %v674_v35  ;;  %v726_v16 = vsel %vm723_vm0, %v725_v44, %v721_v45 }
 0x492   : > { %v734_v49 = vmul.f32 %v1030_v46, %v726_v16 }
 0x493   : > { %v677_v38 = vmul.f32 0.5, %v675_v34 }
 0x495   : > { %v678_v40 = vadd.f32 %v677_v38, %v676_v37 }
 0x497   : > { %v679_v43 = vadd.f32 1e-08, %v678_v40 }
 0x499   : > { %1031 = vlog2.f32 %v679_v43 }
 0x49a   : > { %1033 = vrsqrt.f32 %v753_v58 }
 0x49b   : > { %1035 = vrcp.f32 %v1249_v53 }
 0x49f   : > { %v1032_v47 = vpop.eup %1031 }
 0x4a0   : > { %v681_v48 = vmul.f32 0.6931472, %v1032_v47  ;;  %v1034_v52 = vpop.eup %1033 }
 0x4a1   : > { %v755_v54 = vmul.f32 %v1034_v52, %v753_v58  ;;  %v1036_v55 = vpop.eup %1035 }
 0x4a2   : > { %v735_v50 = vmul.f32 %v734_v49, %v681_v48  ;;  %v746_v57 = vmul.f32 8.0, %v1036_v55  ;;  %vm750_vm4 = vweird.f32 %v1036_v55 }
 0x4a3   : > { %v756_v56 = vmul.f32 %v1034_v52, %v755_v54 }
 0x4a4   : > { %v736_v51 = vsel %vm479_vm2, %v735_v50, 0.0  ;;  %v747_v60 = vsub.f32 1.0, %v746_v57  ;;  %vm761_vm2 = vcmp.eq.f32.partialorder %v753_v58, inf }
 0x4a5   : > { %737 = vadd.xlane.f32.xlu1 %v736_v51  ;;  %v757_v59 = vmul.f32 0.5, %v756_v56 }
 0x4a6   : > { %v748_v62 = vmul.f32 %v1036_v55, %v747_v60 }
 0x4a7   : > { %v758_v61 = vsub.f32 1.5, %v757_v59 }
 0x4a8   : > { %v749_v0 = vadd.f32 %v1036_v55, %v748_v62 }
 0x4a9   : > { %v759_v63 = vmul.f32 %v1034_v52, %v758_v61 }
 0x4aa   : > { %v751_v3 = vsel %vm750_vm4, %v1036_v55, %v749_v0 }
 0x4ab   : > { %v760_v2 = vmul.f32 %v759_v63, %v753_v58  ;;  %v752_v6 = vmul.f32 %v751_v3, %v744_v1 }
 0x4ad   : > { %v762_v4 = vsel %vm761_vm2, %v753_v58, %v760_v2  ;;  %v767_v30 = vmul.f32 0.1, %v752_v6 }
 0x4ae   : > { %v765_v7 = vsel %vm763_vm5, %v764_v5, %v762_v4 }
 0x4af   : > { %v766_v9 = vmul.f32 0.0001, %v765_v7 }
 0x518   : > { %v738_v8 = vpop.xlane.xlu1 %737 }
 0x519   : > { %v739_v10 = vsub.f32 0.0, %v738_v8 }
 0x51b   : > { %v768_v11 = vadd.f32 %v767_v30, %v739_v10 }
 0x51d   : > { %v769_v12 = vadd.f32 %v768_v11, %v766_v9 }
 0x51f   : > { %770 = vst.msk [vmem:[#allocation15] sm:$0x1] %vm502_vm15, %v769_v12 }
 0x520 PF: > { %p920_p4 = scmp.eq.s32.totalorder %s1333_s0, 1  ;;  %s1250_s26 = smov [#allocation15]  }
 0x521   : > { %s777_s29 = sshll.u32 %s1250_s26, 4  ;;  %s779_s24 = sshll.u32 %s1549_s9, 4  ;;  %s778_s29 = int_to_ptr.vmem [resolvable:$true] %s777_s29  ;;  %s780_s24 = int_to_ptr.hbm [resolvable:$true] %s779_s24 }
 0x522   : > { %898 = dma.vmem_to_hbm [thread:$0]  (%p920_p4), %s778_s29, 16, %s780_s24, [#allocation9]  }
 0x523   : > { %1215 = dma.done.wait (%p920_p4), [#allocation9], 16  }
 0x524   : > { %1217 = vsyncadd (%p920_p4), [#allocation9], 4294967280 }
 0x525 PF: > { %p23_p5 = scmp.ge.s32.totalorder %s1386_s25, 4   ;;  %s1557_s11 = smov %s1224_s12 }
 0x526   : > { %s1526_s12 = smov 0   ;;  %s1558_s13 = smov %s1232_s14 }
 0x527   : > { %s1559_s14 = smov %s1236_s15  ;;  %s1560_s15 = smov %s1397_s17 }
 0x528   : > { %s1561_s16 = smov %s1386_s25  ;;  %25 = sbr.rel (!%p23_p5) target bundleno = 9 (0x9), region = 111 }
 0x52d   :  { %793 = vsyncpa [#allocation8], 1 }
 0x52e   :  { %795 = vsyncpa [#allocation8 + $0x1], 1 }
 0x52f   :  { %796 = vsyncpa [#allocation12], 1 }
 0x530   :  { %797 = vsyncpa [#allocation9], 1 }
 0x531   :  { %799 = vsyncpa [#allocation9 + $0x1], 1 }
 0x532   :  { %800 = vsyncpa [#allocation10], 1 }
 0x533   :  { %802 = vsyncpa [#allocation10 + $0x1], 1 }

</bundles_post_ra>
